<compile_context>
chip_gen: v7x
topology: tpu7x:2x2x1
jax: 0.10.0
libtpu: 0.0.40
codegen_flags: <defaults>
</compile_context>

<pallas_src>
import functools

import numpy as np
import jax
import jax.numpy as jnp
from jax.experimental import pallas as pl
from jax.experimental.pallas import tpu as pltpu


# ---------------------------------------------------------------------------
# hardware-aware budgets & capability probes
# ---------------------------------------------------------------------------
def _round_up(x, m):
    return ((x + m - 1) // m) * m


@functools.lru_cache(None)
def _vmem_capacity_bytes():
    try:
        cap = getattr(pltpu.get_tpu_info(), "vmem_capacity_bytes", None)
        if cap:
            return int(cap)
    except Exception:
        pass
    return 128 * 1024 * 1024          # v5e / v6e physical VMEM fallback


def _vmem_budget_bytes():
    # ~0.72 of physical capacity: ~46 MiB on v7x (64 MiB), ~92 MiB on v5e/v6e.
    return int(0.72 * _vmem_capacity_bytes())


@functools.lru_cache(None)
def _single_buffering_supported():
    """Probe whether BlockSpec(pipeline_mode=pl.Buffered(1)) lowers here."""
    try:
        def _k(x_ref, o_ref):
            o_ref[...] = x_ref[...] + 1.0
        x = jnp.zeros((8, 128), jnp.float32)
        pl.pallas_call(
            _k,
            out_shape=jax.ShapeDtypeStruct((8, 128), jnp.float32),
            grid=(1,),
            in_specs=[pl.BlockSpec((8, 128), lambda i: (0, 0),
                                   pipeline_mode=pl.Buffered(1))],
            out_specs=pl.BlockSpec((8, 128), lambda i: (0, 0)),
        )(x)
        return True
    except Exception:
        return False


def _resident_spec(block_shape, index_map):
    """Spec for a block whose index never changes: single-buffer if possible."""
    if _single_buffering_supported():
        return pl.BlockSpec(block_shape, index_map, pipeline_mode=pl.Buffered(1))
    return pl.BlockSpec(block_shape, index_map)


# ---------------------------------------------------------------------------
# tile / head-group selection (budget driven)
# ---------------------------------------------------------------------------
def _head_group_candidates(num_heads, head_dim, max_lanes):
    """Head-group sizes whose lane width is a multiple of 128 (or full D)."""
    cands = []
    for g in range(num_heads, 0, -1):
        if num_heads % g:
            continue
        if g == num_heads or (g * head_dim) % 128 == 0:
            cands.append(g)
    pref = [g for g in cands if g * head_dim <= max_lanes]
    if not pref:                       # a single head already exceeds the cap
        pref = [cands[-1]]
    return pref                        # descending group size


def _pick_attention_tiles(num_heads, head_dim, seq_len, d_model, budget,
                          cd_bytes, w_bytes, return_weights, max_lanes):
    """Pick (heads_per_block, q_tile, padded_seq) that fit the VMEM budget."""
    s8 = _round_up(seq_len, 8)
    fallback = None
    for g in _head_group_candidates(num_heads, head_dim, max_lanes):
        gdh = g * head_dim
        for tq_base in (512, 256, 128, 64, 32, 16, 8):
            tq = min(tq_base, s8)
            s_pad = _round_up(seq_len, tq)
            need = (2 * tq * gdh * cd_bytes             # q block (double buffered)
                    + 2 * 2 * s_pad * gdh * cd_bytes    # k + v blocks
                    + 2 * gdh * d_model * cd_bytes      # Wo row-slice
                    + 2 * tq * d_model * 4              # fused output block
                    + tq * d_model * 4                  # f32 accumulator scratch
                    + 4 * tq * s_pad * 4)               # score / softmax temporaries
            if return_weights:
                need += 2 * g * tq * s_pad * w_bytes    # attention-weights block
            fallback = (g, tq, s_pad)
            if need <= 0.85 * budget:
                return g, tq, s_pad
    return fallback


def _pick_projection_tiles(s_pad, d_model, budget, cd_bytes):
    """Pick (seq_tile, column_tile) for the fused QKV projection."""
    wbuf = 1 if _single_buffering_supported() else 2
    tn = d_model
    for cand in (d_model, 1024, 512, 256, 128):
        if cand > d_model or d_model % cand:
            continue
        tn = cand
        if wbuf * 3 * d_model * cand * cd_bytes <= 0.5 * budget:
            break
    for ts_base in (1024, 512, 256, 128, 64, 32, 16, 8):
        ts = min(ts_base, s_pad)
        if s_pad % ts:
            continue
        need = (2 * ts * d_model * cd_bytes             # x block
                + wbuf * 3 * d_model * tn * cd_bytes    # stacked weights
                + 3 * 2 * ts * tn * cd_bytes            # q/k/v output blocks
                + 2 * ts * max(tn, 128) * 4)            # f32 temporaries
        if need <= 0.85 * budget:
            return ts, tn
    return 8, tn


# ---------------------------------------------------------------------------
# Kernel 1a: fused Q/K/V projection (self-attention), N-tiled over columns
#   weights are stacked as (3, D, D) = [Wq, Wk, Wv]; bias (3, 1, D)
# ---------------------------------------------------------------------------
def _qkv_self_kernel(x_ref, w_ref, b_ref, q_ref, k_ref, v_ref):
    x = x_ref[0].astype(w_ref.dtype)                      # (Ts, D)
    q_ref[0] = (jnp.dot(x, w_ref[0], preferred_element_type=jnp.float32)
                + b_ref[0]).astype(q_ref.dtype)
    k_ref[0] = (jnp.dot(x, w_ref[1], preferred_element_type=jnp.float32)
                + b_ref[1]).astype(k_ref.dtype)
    v_ref[0] = (jnp.dot(x, w_ref[2], preferred_element_type=jnp.float32)
                + b_ref[2]).astype(v_ref.dtype)


# ---------------------------------------------------------------------------
# Kernel 1b: Q/K/V projection, cross-attention (three distinct inputs)
# ---------------------------------------------------------------------------
def _qkv_cross_kernel(xq_ref, xk_ref, xv_ref, w_ref, b_ref, q_ref, k_ref, v_ref):
    cd = w_ref.dtype
    q_ref[0] = (jnp.dot(xq_ref[0].astype(cd), w_ref[0],
                        preferred_element_type=jnp.float32)
                + b_ref[0]).astype(q_ref.dtype)
    k_ref[0] = (jnp.dot(xk_ref[0].astype(cd), w_ref[1],
                        preferred_element_type=jnp.float32)
                + b_ref[1]).astype(k_ref.dtype)
    v_ref[0] = (jnp.dot(xv_ref[0].astype(cd), w_ref[2],
                        preferred_element_type=jnp.float32)
                + b_ref[2]).astype(v_ref.dtype)


def qkv_projection(query_in, key_in, value_in, w_qkv, b_qkv, *, ts, tn,
                   out_dtype, vmem_limit):
    """query/key/value: (B, S_pad, D); w_qkv: (3, D, D); b_qkv: (3, 1, D)."""
    B, S_pad, D = query_in.shape
    n_tiles = D // tn
    out_shape = tuple(jax.ShapeDtypeStruct((B, S_pad, D), out_dtype)
                      for _ in range(3))

    if query_in is key_in and key_in is value_in:
        # Self-attention: x read once per tile; column axis is the OUTER grid
        # axis so the (3, D, Tn) weight slab is DMA'd once per column tile.
        x_spec = pl.BlockSpec((1, ts, D), lambda n, b, s: (b, s, 0))
        if n_tiles == 1:
            w_spec = _resident_spec((3, D, tn), lambda n, b, s: (0, 0, n))
            b_spec = _resident_spec((3, 1, tn), lambda n, b, s: (0, 0, n))
        else:
            w_spec = pl.BlockSpec((3, D, tn), lambda n, b, s: (0, 0, n))
            b_spec = pl.BlockSpec((3, 1, tn), lambda n, b, s: (0, 0, n))
        o_spec = pl.BlockSpec((1, ts, tn), lambda n, b, s: (b, s, n))
        return pl.pallas_call(
            _qkv_self_kernel,
            out_shape=out_shape,
            grid=(n_tiles, B, S_pad // ts),
            in_specs=[x_spec, w_spec, b_spec],
            out_specs=(o_spec, o_spec, o_spec),
            compiler_params=pltpu.CompilerParams(
                dimension_semantics=("arbitrary", "parallel", "parallel"),
                vmem_limit_bytes=vmem_limit),
        )(query_in, w_qkv, b_qkv)

    # Cross-attention path.  TODO(synk): N-tile this path too for huge d_model.
    x_spec = pl.BlockSpec((1, ts, D), lambda b, s: (b, s, 0))
    w_spec = _resident_spec((3, D, D), lambda b, s: (0, 0, 0))
    b_spec = _resident_spec((3, 1, D), lambda b, s: (0, 0, 0))
    o_spec = pl.BlockSpec((1, ts, D), lambda b, s: (b, s, 0))
    return pl.pallas_call(
        _qkv_cross_kernel,
        out_shape=out_shape,
        grid=(B, S_pad // ts),
        in_specs=[x_spec, x_spec, x_spec, w_spec, b_spec],
        out_specs=(o_spec, o_spec, o_spec),
        compiler_params=pltpu.CompilerParams(
            dimension_semantics=("parallel", "parallel"),
            vmem_limit_bytes=vmem_limit),
    )(query_in, key_in, value_in, w_qkv, b_qkv)


# ---------------------------------------------------------------------------
# Kernel 2: attention + fused output projection.
#   grid = (batch, q-tile, head-group); the head-group axis is a reduction:
#   acc += softmax(QK^T/sqrt(dh)) V @ Wo[group rows]; bias added at the end.
# ---------------------------------------------------------------------------
def _attention_kernel(q_ref, k_ref, v_ref, wo_ref, bo_ref, *refs,
                      num_groups, heads_per_block, head_dim, seq_len,
                      compute_dtype, exp_dtype, return_weights):
    if return_weights:
        o_ref, w_ref, acc_ref = refs
    else:
        o_ref, acc_ref = refs
        w_ref = None

    g_idx = pl.program_id(2)

    @pl.when(g_idx == 0)
    def _init():
        acc_ref[...] = jnp.zeros_like(acc_ref)

    G, Dh = heads_per_block, head_dim
    cd = compute_dtype
    scale = 1.0 / np.sqrt(Dh)

    q = q_ref[0]                      # (Tq, G*Dh)
    k = k_ref[0]                      # (S_pad, G*Dh)
    v = v_ref[0]
    tq, s_pad = q.shape[0], k.shape[0]

    key_mask = None
    if s_pad != seq_len:              # static: mask padded key columns
        key_pos = jax.lax.broadcasted_iota(jnp.int32, (tq, s_pad), 1)
        key_mask = key_pos < seq_len

    head_outputs = []
    for h in range(G):                # unrolled: 2-D MXU ops, no (G, Dh) relayout
        lo = h * Dh
        qh = q[:, lo:lo + Dh]
        kh = k[:, lo:lo + Dh]
        vh = v[:, lo:lo + Dh]
        s = jax.lax.dot_general(qh, kh, (((1,), (1,)), ((), ())),
                                preferred_element_type=jnp.float32) * scale
        if key_mask is not None:
            s = jnp.where(key_mask, s, -1e30)
        m = jnp.max(s, axis=-1, keepdims=True)
        e = jnp.exp((s - m).astype(exp_dtype)).astype(jnp.float32)
        l = jnp.sum(e, axis=-1, keepdims=True)
        p = e * (1.0 / l)             # exact normalization (user-visible weights)
        if w_ref is not None:
            w_ref[0, h] = p.astype(w_ref.dtype)
        head_outputs.append(
            jnp.dot(p.astype(cd), vh, preferred_element_type=jnp.float32))

    attn_out = jnp.concatenate(head_outputs, axis=-1).astype(cd)   # (Tq, G*Dh)
    acc_ref[...] += jnp.dot(attn_out, wo_ref[...],
                            preferred_element_type=jnp.float32)    # (Tq, D)

    @pl.when(g_idx == num_groups - 1)
    def _finalize():
        o_ref[0] = (acc_ref[...] + bo_ref[...]).astype(o_ref.dtype)


def attention_with_out_projection(q, k, v, wo, bo, *, num_heads, heads_per_block,
                                  q_tile, seq_len, out_dtype, weights_dtype,
                                  return_weights, compute_dtype, exp_dtype,
                                  vmem_limit):
    B, S_pad, D = q.shape
    Dh = D // num_heads
    G = heads_per_block
    gdh = G * Dh
    n_groups = num_heads // G

    kernel = functools.partial(
        _attention_kernel, num_groups=n_groups, heads_per_block=G, head_dim=Dh,
        seq_len=seq_len, compute_dtype=compute_dtype, exp_dtype=exp_dtype,
        return_weights=return_weights)

    q_spec = pl.BlockSpec((1, q_tile, gdh), lambda b, qi, g: (b, qi, g))
    kv_spec = pl.BlockSpec((1, S_pad, gdh), lambda b, qi, g: (b, 0, g))
    wo_spec = pl.BlockSpec((gdh, D), lambda b, qi, g: (g, 0))
    bo_spec = _resident_spec((1, D), lambda b, qi, g: (0, 0))
    o_spec = pl.BlockSpec((1, q_tile, D), lambda b, qi, g: (b, qi, 0))

    out_shape = [jax.ShapeDtypeStruct((B, S_pad, D), out_dtype)]
    out_specs = [o_spec]
    if return_weights:
        out_shape.append(
            jax.ShapeDtypeStruct((B, num_heads, S_pad, S_pad), weights_dtype))
        out_specs.append(
            pl.BlockSpec((1, G, q_tile, S_pad), lambda b, qi, g: (b, g, qi, 0)))

    results = pl.pallas_call(
        kernel,
        out_shape=tuple(out_shape),
        grid=(B, S_pad // q_tile, n_groups),
        in_specs=[q_spec, kv_spec, kv_spec, wo_spec, bo_spec],
        out_specs=tuple(out_specs),
        scratch_shapes=[pltpu.VMEM((q_tile, D), jnp.float32)],
        compiler_params=pltpu.CompilerParams(
            dimension_semantics=("parallel", "parallel", "arbitrary"),
            vmem_limit_bytes=vmem_limit),
    )(q, k, v, wo, bo)

    if return_weights:
        out, weights = results
        return out, weights
    (out,) = results
    return out, None


# ---------------------------------------------------------------------------
# MultiHeadAttention forward (glue in plain JAX, hot paths in Pallas)
# ---------------------------------------------------------------------------
def multi_head_attention(params, query_in, key_in, value_in, num_heads,
                         compute_dtype=None, exp_dtype=None, weights_dtype=None,
                         return_weights=True, max_group_lanes=None):
    """Eval-mode forward: dropout layers are identity.

    compute_dtype : MXU operand dtype (bf16 recommended on v5e/v6e/v7x);
                    accumulation and softmax statistics stay in float32.
    exp_dtype     : dtype of the exp() operand (bf16 worthwhile on v6e/v7x
                    whose EUP is bf16-native; keep f32 on v5e).
    weights_dtype : storage dtype of the returned attention weights
                    (bf16 halves the dominant O(S^2) HBM writeback).
    return_weights: False skips the attention-weights output entirely.
    max_group_lanes: optional cap on heads_per_block * head_dim.
    """
    B, S, d_model = query_in.shape
    assert d_model % num_heads == 0
    head_dim = d_model // num_heads

    is_self = query_in is key_in and key_in is value_in
    if not is_self:
        # TODO(synk): differing query vs key/value sequence lengths unsupported.
        assert key_in.shape == query_in.shape and value_in.shape == query_in.shape

    in_dtype = query_in.dtype
    cd = jnp.dtype(compute_dtype) if compute_dtype is not None else jnp.dtype(in_dtype)
    ed = jnp.dtype(exp_dtype) if exp_dtype is not None else jnp.dtype(jnp.float32)
    wd = jnp.dtype(weights_dtype) if weights_dtype is not None else jnp.dtype(in_dtype)

    capacity = _vmem_capacity_bytes()
    budget = _vmem_budget_bytes()
    max_lanes = 128 if capacity <= 80 * 1024 * 1024 else 512   # smaller groups on v7x
    if max_group_lanes is not None:
        max_lanes = min(max_lanes, max_group_lanes)

    G, q_tile, s_pad = _pick_attention_tiles(
        num_heads, head_dim, S, d_model, budget, cd.itemsize, wd.itemsize,
        return_weights, max_lanes)
    ts, tn = _pick_projection_tiles(s_pad, d_model, budget, cd.itemsize)

    # Stacked projection weights (would be stored pre-stacked in production).
    w_qkv = jnp.stack([params["wq"], params["wk"], params["wv"]]).astype(cd)
    b_qkv = jnp.stack([params["bq"], params["bk"], params["bv"]]).reshape(
        3, 1, d_model).astype(jnp.float32)
    wo = params["wo"].astype(cd)
    bo = params["bo"].reshape(1, d_model).astype(jnp.float32)

    # Pad the sequence axis to the tile grid; padded keys are masked in-kernel.
    if s_pad != S:
        pad = [(0, 0), (0, s_pad - S), (0, 0)]
        query_p = jnp.pad(query_in, pad)
        key_p = query_p if is_self else jnp.pad(key_in, pad)
        value_p = query_p if is_self else jnp.pad(value_in, pad)
    else:
        query_p, key_p, value_p = query_in, key_in, value_in

    q, k, v = qkv_projection(query_p, key_p, value_p, w_qkv, b_qkv,
                             ts=ts, tn=tn, out_dtype=cd, vmem_limit=budget)

    out, weights = attention_with_out_projection(
        q, k, v, wo, bo, num_heads=num_heads, heads_per_block=G, q_tile=q_tile,
        seq_len=S, out_dtype=in_dtype, weights_dtype=wd,
        return_weights=return_weights, compute_dtype=cd, exp_dtype=ed,
        vmem_limit=budget)

    if s_pad != S:
        out = out[:, :S, :]
        if weights is not None:
            weights = weights[:, :, :S, :S]
    return out, weights


# ---------------------------------------------------------------------------
# Deterministic parameter init (PyTorch Linear-style uniform bound)
# ---------------------------------------------------------------------------
def init_params(key, d_model):
    bound = 1.0 / np.sqrt(d_model)
    names = ["wq", "bq", "wk", "bk", "wv", "bv", "wo", "bo"]
    keys = jax.random.split(key, len(names))
    params = {}
    for name, k in zip(names, keys):
        shape = (d_model, d_model) if name.startswith("w") else (d_model,)
        params[name] = jax.random.uniform(
            k, shape, jnp.float32, minval=-bound, maxval=bound)
    return params


def _reference(params, q_in, k_in, v_in, num_heads):
    """Pure-JAX f32 reference for the correctness check."""
    B, S, D = q_in.shape
    Dh = D // num_heads
    lin = lambda x, w, b: jnp.einsum("bsd,de->bse", x, w) + b
    sh = lambda x: x.reshape(B, S, num_heads, Dh).transpose(0, 2, 1, 3)
    q = sh(lin(q_in, params["wq"], params["bq"]))
    k = sh(lin(k_in, params["wk"], params["bk"]))
    v = sh(lin(v_in, params["wv"], params["bv"]))
    s = jnp.einsum("bhqd,bhkd->bhqk", q, k) / np.sqrt(Dh)
    p = jax.nn.softmax(s, axis=-1)
    o = jnp.einsum("bhqk,bhkd->bhqd", p, v)
    o = o.transpose(0, 2, 1, 3).reshape(B, S, D)
    return lin(o, params["wo"], params["bo"]), p


if __name__ == "__main__":
    root = jax.random.PRNGKey(0)
    kp, kx, kk, kv = jax.random.split(root, 4)

    # 1) Self-attention, f32, nicely tiled shapes (single head-group).
    B, S, D, H = 2, 8, 32, 4
    params = init_params(kp, D)
    x = jax.random.normal(kx, (B, S, D), jnp.float32)
    out, w = multi_head_attention(params, x, x, x, H)
    out = jax.block_until_ready(out)
    w = jax.block_until_ready(w)
    ref_out, ref_w = _reference(params, x, x, x, H)
    np.testing.assert_allclose(np.asarray(out), np.asarray(ref_out),
                               atol=1e-2, rtol=1e-2)
    np.testing.assert_allclose(np.asarray(w), np.asarray(ref_w),
                               atol=1e-2, rtol=1e-2)

    # 2) Awkward sequence length (S=12): exercises padding + in-kernel key mask.
    S2 = 12
    x2 = jax.random.normal(kk, (B, S2, D), jnp.float32)
    out2, w2 = multi_head_attention(params, x2, x2, x2, H)
    out2 = jax.block_until_ready(out2)
    w2 = jax.block_until_ready(w2)
    ref_out2, ref_w2 = _reference(params, x2, x2, x2, H)
    np.testing.assert_allclose(np.asarray(out2), np.asarray(ref_out2),
                               atol=1e-2, rtol=1e-2)
    np.testing.assert_allclose(np.asarray(w2), np.asarray(ref_w2),
                               atol=1e-2, rtol=1e-2)

    # 3) Cross-attention, bf16 MXU compute + bf16 exp, and max_group_lanes=128
    #    to force two head-groups (exercises the fused output-projection
    #    accumulation across the 'arbitrary' group axis).
    D3, H3, S3 = 256, 4, 16
    params3 = init_params(kv, D3)
    kq3, kk3, kv3 = jax.random.split(jax.random.PRNGKey(1), 3)
    q3 = jax.random.normal(kq3, (B, S3, D3), jnp.float32)
    k3 = jax.random.normal(kk3, (B, S3, D3), jnp.float32)
    v3 = jax.random.normal(kv3, (B, S3, D3), jnp.float32)
    out3, w3 = multi_head_attention(
        params3, q3, k3, v3, H3, compute_dtype=jnp.bfloat16,
        exp_dtype=jnp.bfloat16, max_group_lanes=128)
    out3 = jax.block_until_ready(out3)
    w3 = jax.block_until_ready(w3)
    ref_out3, ref_w3 = _reference(params3, q3, k3, v3, H3)
    np.testing.assert_allclose(np.asarray(out3), np.asarray(ref_out3),
                               atol=3e-2, rtol=3e-2)
    np.testing.assert_allclose(np.asarray(w3), np.asarray(ref_w3),
                               atol=3e-2, rtol=3e-2)

    print("KERNEL_OK")
</pallas_src>

<mosaic_0001>
module attributes {stable_mosaic.version = 11 : i64} {
  func.func @_k(%arg0: i32, %arg1: memref<8x128xf32, #tpu.memory_space<vmem>>, %arg2: memref<8x128xf32, #tpu.memory_space<vmem>>) attributes {dimension_semantics = [#tpu.dimension_semantics<arbitrary>], iteration_bounds = array<i64: 1>, scalar_prefetch = 0 : i64, scratch_operands = 0 : i64, tpu.core_type = #tpu.core_type<tc>, window_params = [{pipeline_mode = #tpu.pipeline_mode<synchronous>, transform_indices = @transform_0, window_bounds = array<i64: 8, 128>}, {pipeline_mode = #tpu.pipeline_mode<synchronous>, transform_indices = @transform_1, window_bounds = array<i64: 8, 128>}]} {
    %c0 = arith.constant 0 : index
    %c0_0 = arith.constant 0 : index
    %0 = vector.load %arg1[%c0, %c0_0] : memref<8x128xf32, #tpu.memory_space<vmem>>, vector<8x128xf32>
    %cst = arith.constant 1.000000e+00 : f32
    %1 = vector.broadcast %cst : f32 to vector<8x128xf32>
    %2 = arith.addf %0, %1 : vector<8x128xf32>
    %c0_1 = arith.constant 0 : index
    %c0_2 = arith.constant 0 : index
    %3 = vector.load %arg2[%c0_1, %c0_2] : memref<8x128xf32, #tpu.memory_space<vmem>>, vector<8x128xf32>
    tpu.vector_store %arg2[%c0_1, %c0_2], %2 {strides = array<i32>} : memref<8x128xf32, #tpu.memory_space<vmem>>, vector<8x128xf32>,
    return
  }
  func.func @transform_0(%arg0: i32) -> (i32, i32) {
    %c0_i32 = arith.constant 0 : i32
    %c0_i32_0 = arith.constant 0 : i32
    %c0_i32_1 = arith.constant 0 : i32
    return %c0_i32, %c0_i32_0 : i32, i32
  }
  func.func @transform_1(%arg0: i32) -> (i32, i32) {
    %c0_i32 = arith.constant 0 : i32
    %c0_i32_0 = arith.constant 0 : i32
    %c0_i32_1 = arith.constant 0 : i32
    return %c0_i32, %c0_i32_0 : i32, i32
  }
}

module attributes {stable_mosaic.version = 11 : i64} {
  func.func @_qkv_self_kernel(%arg0: i32, %arg1: i32, %arg2: i32, %arg3: memref<1x8x32xf32, #tpu.memory_space<vmem>>, %arg4: memref<3x32x32xf32, #tpu.memory_space<vmem>>, %arg5: memref<3x1x32xf32, #tpu.memory_space<vmem>>, %arg6: memref<1x8x32xf32, #tpu.memory_space<vmem>>, %arg7: memref<1x8x32xf32, #tpu.memory_space<vmem>>, %arg8: memref<1x8x32xf32, #tpu.memory_space<vmem>>) attributes {dimension_semantics = [#tpu.dimension_semantics<arbitrary>, #tpu.dimension_semantics<parallel>, #tpu.dimension_semantics<parallel>], iteration_bounds = array<i64: 1, 2, 1>, scalar_prefetch = 0 : i64, scratch_operands = 0 : i64, tpu.core_type = #tpu.core_type<tc>, window_params = [{transform_indices = @transform_0, window_bounds = array<i64: 1, 8, 32>}, {transform_indices = @transform_1, window_bounds = array<i64: 3, 32, 32>}, {transform_indices = @transform_2, window_bounds = array<i64: 3, 1, 32>}, {transform_indices = @transform_3, window_bounds = array<i64: 1, 8, 32>}, {transform_indices = @transform_4, window_bounds = array<i64: 1, 8, 32>}, {transform_indices = @transform_5, window_bounds = array<i64: 1, 8, 32>}]} {
    %c0 = arith.constant 0 : index
    %c0_0 = arith.constant 0 : index
    %c0_1 = arith.constant 0 : index
    %0 = vector.load %arg3[%c0, %c0_0, %c0_1] : memref<1x8x32xf32, #tpu.memory_space<vmem>>, vector<1x8x32xf32>
    %1 = vector.shape_cast %0 : vector<1x8x32xf32> to vector<8x32xf32>
    %c0_2 = arith.constant 0 : index
    %c0_3 = arith.constant 0 : index
    %c0_4 = arith.constant 0 : index
    %2 = vector.load %arg4[%c0_2, %c0_3, %c0_4] : memref<3x32x32xf32, #tpu.memory_space<vmem>>, vector<1x32x32xf32>
    %3 = vector.shape_cast %2 : vector<1x32x32xf32> to vector<32x32xf32>
    %cst = arith.constant dense<0.000000e+00> : vector<8x32xf32>
    %4 = tpu.matmul %1, %3, %cst {dimension_numbers = #tpu.dot_dimension_numbers<[1], [0], [0], [1], [0, 0, 1, 1], [], []>} : vector<8x32xf32>, vector<32x32xf32>, vector<8x32xf32> -> vector<8x32xf32>
    %c0_5 = arith.constant 0 : index
    %c0_6 = arith.constant 0 : index
    %c0_7 = arith.constant 0 : index
    %5 = vector.load %arg5[%c0_5, %c0_6, %c0_7] : memref<3x1x32xf32, #tpu.memory_space<vmem>>, vector<1x1x32xf32>
    %6 = vector.shape_cast %5 : vector<1x1x32xf32> to vector<1x32xf32>
    %7 = vector.broadcast %6 : vector<1x32xf32> to vector<8x32xf32>
    %8 = arith.addf %4, %7 : vector<8x32xf32>
    %c0_8 = arith.constant 0 : index
    %c0_9 = arith.constant 0 : index
    %c0_10 = arith.constant 0 : index
    %9 = vector.load %arg6[%c0_8, %c0_9, %c0_10] : memref<1x8x32xf32, #tpu.memory_space<vmem>>, vector<1x8x32xf32>
    %10 = vector.shape_cast %9 : vector<1x8x32xf32> to vector<8x32xf32>
    %11 = vector.shape_cast %8 : vector<8x32xf32> to vector<1x8x32xf32>
    tpu.vector_store %arg6[%c0_8, %c0_9, %c0_10], %11 {strides = array<i32>} : memref<1x8x32xf32, #tpu.memory_space<vmem>>, vector<1x8x32xf32>,
    %c1 = arith.constant 1 : index
    %c0_11 = arith.constant 0 : index
    %c0_12 = arith.constant 0 : index
    %12 = vector.load %arg4[%c1, %c0_11, %c0_12] : memref<3x32x32xf32, #tpu.memory_space<vmem>>, vector<1x32x32xf32>
    %13 = vector.shape_cast %12 : vector<1x32x32xf32> to vector<32x32xf32>
    %cst_13 = arith.constant dense<0.000000e+00> : vector<8x32xf32>
    %14 = tpu.matmul %1, %13, %cst_13 {dimension_numbers = #tpu.dot_dimension_numbers<[1], [0], [0], [1], [0, 0, 1, 1], [], []>} : vector<8x32xf32>, vector<32x32xf32>, vector<8x32xf32> -> vector<8x32xf32>
    %c1_14 = arith.constant 1 : index
    %c0_15 = arith.constant 0 : index
    %c0_16 = arith.constant 0 : index
    %15 = vector.load %arg5[%c1_14, %c0_15, %c0_16] : memref<3x1x32xf32, #tpu.memory_space<vmem>>, vector<1x1x32xf32>
    %16 = vector.shape_cast %15 : vector<1x1x32xf32> to vector<1x32xf32>
    %17 = vector.broadcast %16 : vector<1x32xf32> to vector<8x32xf32>
    %18 = arith.addf %14, %17 : vector<8x32xf32>
    %c0_17 = arith.constant 0 : index
    %c0_18 = arith.constant 0 : index
    %c0_19 = arith.constant 0 : index
    %19 = vector.load %arg7[%c0_17, %c0_18, %c0_19] : memref<1x8x32xf32, #tpu.memory_space<vmem>>, vector<1x8x32xf32>
    %20 = vector.shape_cast %19 : vector<1x8x32xf32> to vector<8x32xf32>
    %21 = vector.shape_cast %18 : vector<8x32xf32> to vector<1x8x32xf32>
    tpu.vector_store %arg7[%c0_17, %c0_18, %c0_19], %21 {strides = array<i32>} : memref<1x8x32xf32, #tpu.memory_space<vmem>>, vector<1x8x32xf32>,
    %c2 = arith.constant 2 : index
    %c0_20 = arith.constant 0 : index
    %c0_21 = arith.constant 0 : index
    %22 = vector.load %arg4[%c2, %c0_20, %c0_21] : memref<3x32x32xf32, #tpu.memory_space<vmem>>, vector<1x32x32xf32>
    %23 = vector.shape_cast %22 : vector<1x32x32xf32> to vector<32x32xf32>
    %cst_22 = arith.constant dense<0.000000e+00> : vector<8x32xf32>
    %24 = tpu.matmul %1, %23, %cst_22 {dimension_numbers = #tpu.dot_dimension_numbers<[1], [0], [0], [1], [0, 0, 1, 1], [], []>} : vector<8x32xf32>, vector<32x32xf32>, vector<8x32xf32> -> vector<8x32xf32>
    %c2_23 = arith.constant 2 : index
    %c0_24 = arith.constant 0 : index
    %c0_25 = arith.constant 0 : index
    %25 = vector.load %arg5[%c2_23, %c0_24, %c0_25] : memref<3x1x32xf32, #tpu.memory_space<vmem>>, vector<1x1x32xf32>
    %26 = vector.shape_cast %25 : vector<1x1x32xf32> to vector<1x32xf32>
    %27 = vector.broadcast %26 : vector<1x32xf32> to vector<8x32xf32>
    %28 = arith.addf %24, %27 : vector<8x32xf32>
    %c0_26 = arith.constant 0 : index
    %c0_27 = arith.constant 0 : index
    %c0_28 = arith.constant 0 : index
    %29 = vector.load %arg8[%c0_26, %c0_27, %c0_28] : memref<1x8x32xf32, #tpu.memory_space<vmem>>, vector<1x8x32xf32>
    %30 = vector.shape_cast %29 : vector<1x8x32xf32> to vector<8x32xf32>
    %31 = vector.shape_cast %28 : vector<8x32xf32> to vector<1x8x32xf32>
    tpu.vector_store %arg8[%c0_26, %c0_27, %c0_28], %31 {strides = array<i32>} : memref<1x8x32xf32, #tpu.memory_space<vmem>>, vector<1x8x32xf32>,
    return
  }
  func.func @transform_0(%arg0: i32, %arg1: i32, %arg2: i32) -> (i32, i32, i32) {
    %c0_i32 = arith.constant 0 : i32
    %c0_i32_0 = arith.constant 0 : i32
    return %arg1, %arg2, %c0_i32 : i32, i32, i32
  }
  func.func @transform_1(%arg0: i32, %arg1: i32, %arg2: i32) -> (i32, i32, i32) {
    %c0_i32 = arith.constant 0 : i32
    %c0_i32_0 = arith.constant 0 : i32
    %c0_i32_1 = arith.constant 0 : i32
    return %c0_i32, %c0_i32_0, %arg0 : i32, i32, i32
  }
  func.func @transform_2(%arg0: i32, %arg1: i32, %arg2: i32) -> (i32, i32, i32) {
    %c0_i32 = arith.constant 0 : i32
    %c0_i32_0 = arith.constant 0 : i32
    %c0_i32_1 = arith.constant 0 : i32
    return %c0_i32, %c0_i32_0, %arg0 : i32, i32, i32
  }
  func.func @transform_3(%arg0: i32, %arg1: i32, %arg2: i32) -> (i32, i32, i32) {
    %c0_i32 = arith.constant 0 : i32
    return %arg1, %arg2, %arg0 : i32, i32, i32
  }
  func.func @transform_4(%arg0: i32, %arg1: i32, %arg2: i32) -> (i32, i32, i32) {
    %c0_i32 = arith.constant 0 : i32
    return %arg1, %arg2, %arg0 : i32, i32, i32
  }
  func.func @transform_5(%arg0: i32, %arg1: i32, %arg2: i32) -> (i32, i32, i32) {
    %c0_i32 = arith.constant 0 : i32
    return %arg1, %arg2, %arg0 : i32, i32, i32
  }
}

</mosaic_0001>

<bundles_post_ra>
// kernel: tpu_custom_call.1
= control target key start
LH: loop header
LB: loop body
LE: loop exit
PB: predicated region body
PF: predicated region fallthrough
CT: control target
= control target key end

     0   :  { %6 = vsyncpa [#allocation3], 0  ;;  %s125_s0 = inlined_call_operand.hbm [shape: f32[8,128], index: 0, kind: input, shape index: {}]   ;;  %s126_s1 = inlined_call_operand.hbm [shape: f32[8,128], index: 1, kind: output, shape index: {}]  }
   0x1   :  { %7 = vsyncpa [#allocation4], 0  ;;  %s89_s6 = smov [#allocation2]   ;;  %s41_s10 = scalar_lea.hbm %s125_s0, 128 }
   0x2   :  { %s14_s7 = sshll.u32 %s89_s6, 4  ;;  %p42_p0 = scmp.ne.s32.totalorder %s125_s0, %s41_s10  ;;  %s15_s7 = int_to_ptr.vmem [resolvable:$true] %s14_s7 }
   0x3   :  { %p45_p1 = scmp.lt.u32.totalorder %s41_s10, %s125_s0 }
   0x5   :  { %p47_p2 = pnand %p45_p1, %p42_p0 }
   0x7   :  { %50 = shalt.err (!%p47_p2)
}
   0x8   :  { %s51_s15 = scalar_lea.vmem %s15_s7, 128  ;;  %p56_p4 = scmp.lt.s32.totalorder %s15_s7, %s15_s7 }
   0x9   :  { %p52_p3 = scmp.ne.s32.totalorder %s15_s7, %s51_s15  ;;  %p57_p5 = scmp.lt.s32.totalorder %s51_s15, %s51_s15 }
   0xb   :  { %p58_p6 = por %p57_p5, %p56_p4 }
   0xd   :  { %p59_p7 = pnand %p58_p6, %p52_p3 }
   0xf   :  { %62 = shalt.err (!%p59_p7)
}
  0x10   :  { %17 = dma.hbm_to_vmem [thread:$0]  %s125_s0, 128, %s15_s7, [#allocation3]  }
  0x11   :  { %85 = dma.done.wait [#allocation3], 128  }
  0x12   :  { %86 = vsyncadd [#allocation3], 4294967168  ;;  %s90_s18 = smov [#allocation5]   ;;  %v21_v0 = vld [vmem:[#allocation2] sm:$0xff] }
  0x13   :  { %s30_s19 = sshll.u32 %s90_s18, 4  ;;  %v22_v1 = vadd.f32 1.0, %v21_v0  ;;  %s31_s19 = int_to_ptr.vmem [resolvable:$true] %s30_s19 }
  0x14   :  { %s63_s20 = scalar_lea.vmem %s31_s19, 128  ;;  %p68_p9 = scmp.lt.s32.totalorder %s31_s19, %s31_s19 }
  0x15   :  { %23 = vst [vmem:[#allocation5] sm:$0xff] %v22_v1  ;;  %p64_p8 = scmp.ne.s32.totalorder %s31_s19, %s63_s20  ;;  %p69_p10 = scmp.lt.s32.totalorder %s63_s20, %s63_s20 }
  0x17   :  { %p70_p11 = por %p69_p10, %p68_p9 }
  0x19   :  { %p71_p12 = pnand %p70_p11, %p64_p8 }
  0x1b   :  { %74 = shalt.err (!%p71_p12)
}
  0x1c   :  { %s75_s23 = scalar_lea.hbm %s126_s1, 128 }
  0x1d   :  { %p76_p13 = scmp.ne.s32.totalorder %s126_s1, %s75_s23  ;;  %p79_p0 = scmp.lt.u32.totalorder %s75_s23, %s126_s1 }
  0x1f   :  { %p81_p1 = pnand %p79_p0, %p76_p13 }
  0x21   :  { %84 = shalt.err (!%p81_p1)
}
  0x22   :  { %33 = dma.vmem_to_hbm [thread:$0]  %s31_s19, 128, %s126_s1, [#allocation4]  }
  0x23   :  { %87 = dma.done.wait [#allocation4], 128  }
  0x24   :  { %88 = vsyncadd [#allocation4], 4294967168 }
  0x25   :  { %37 = vsyncpa [#allocation3], 1 }
  0x26   :  { %38 = vsyncpa [#allocation4], 1 }

// kernel: tpu_custom_call.1
= control target key start
LH: loop header
LB: loop body
LE: loop exit
PB: predicated region body
PF: predicated region fallthrough
CT: control target
= control target key end

     0   :  { %s1620_s0 = inlined_call_operand.hbm [shape: f32[2,8,32], index: 0, kind: input, shape index: {}]   ;;  %s1621_s1 = inlined_call_operand.hbm [shape: f32[3,32,32], index: 1, kind: input, shape index: {}]   ;;  %s1622_s2 = inlined_call_operand.hbm [shape: f32[3,1,32], index: 2, kind: input, shape index: {}]   ;;  %s1623_s3 = inlined_call_operand.hbm [shape: f32[2,8,32], index: 3, kind: output, shape index: {0}]   ;;  %s1624_s4 = inlined_call_operand.hbm [shape: f32[2,8,32], index: 4, kind: output, shape index: {1}]   ;;  %s1625_s5 = inlined_call_operand.hbm [shape: f32[2,8,32], index: 5, kind: output, shape index: {2}]  }
   0x1   :  { %1630 = sst [smem:[#allocation16_spill]] %s1620_s0 }
   0x2   :  { %11 = vsyncpa [#allocation3], 0 }
   0x3   :  { %13 = vsyncpa [#allocation3 + $0x1], 0 }
   0x4   :  { %14 = vsyncpa [#allocation6], 0 }
   0x5   :  { %15 = vsyncpa [#allocation4], 0 }
   0x6   :  { %17 = vsyncpa [#allocation4 + $0x1], 0 }
   0x7   :  { %18 = vsyncpa [#allocation10], 0 }
   0x8   :  { %20 = vsyncpa [#allocation10 + $0x1], 0  ;;  %s1290_s18 = smov 0   ;;  %s1292_s19 = smov 0  }
   0x9   :  { %s1294_s20 = smov 0   ;;  %s1296_s21 = smov 0  }
   0xa   :  { %s1298_s22 = smov 0   ;;  %s1300_s23 = smov 0  }
   0xb LB: > { %s1321_s24 = sadd.s32 4294967295, %s1245_s23   ;;  %s1629_s25 = sadd.s32 4294967294, %s1245_s23   ;;  %s1245_s23 = sphi %s1300_s23, %s26_s23   ;;  %s1241_s22 = sphi %s1298_s22, %s1651_s22   ;;  %s1237_s21 = sphi %s1296_s21, %s1650_s21   ;;  %s1233_s20 = sphi %s1294_s20, %s1649_s20   ;;  %s1229_s19 = sphi %s1292_s19, %s1648_s19   ;;  %s1225_s18 = sphi %s1290_s18, %s1647_s18  }
   0xc   : > { %p67_p0 = scmp.ne.s32.totalorder %s1229_s19, %s1225_s18  ;;  %p1626_p1 = scmp.eq.s32.totalorder %s1321_s24, 0 }
   0xd   : > { %p153_p3 = scmp.eq.s32.totalorder %s1629_s25, 1  ;;  %p820_p5 = scmp.ge.s32.totalorder %s1245_s23, 1 }
   0xe   : > { %p1332_p4 = por %p1626_p1, %p67_p0  ;;  %p220_p7 = scmp.lt.s32.totalorder %s1245_s23, 3 }
   0xf   : > { %p1337_p6 = por %p153_p3, %p67_p0  ;;  %s1247_s29 = smov [#allocation5]  }
  0x10   : > { %s1631_s26 = scalar_select %p1332_p4, 1, 0 }
  0x11   : > { %s1632_s27 = scalar_select %p1337_p6, 1, 0 }
  0x12   : > { %p1342_p8 = pnand %p820_p5, %p220_p7  ;;  %s234_s30 = sshll.u32 %s1247_s29, 4  ;;  %s1346_s30 = int_to_ptr.vmem [resolvable:$true] %s234_s30 }
  0x13   : > { %s1248_s7 = smov [#allocation7]   ;;  %s1013_s11 = scalar_lea.hbm %s1621_s1, 1536 }
  0x14   : > { %p929_p9 = pneg %p1342_p8  ;;  %s249_s8 = sshll.u32 %s1248_s7, 4  ;;  %s1357_s8 = int_to_ptr.vmem [resolvable:$true] %s249_s8 }
  0x15   : > { %p1014_p12 = scmp.ne.s32.totalorder %s1621_s1, %s1013_s11  ;;  %p1020_p5 = scmp.lt.u32.totalorder %s1013_s11, %s1621_s1 }
  0x16   : > { %p1353_p11 = pnand %p929_p9, %p1626_p1 }
  0x18   : > { %p1015_p13 = pneg %p1353_p11 }
  0x1a   : > { %p1016_p0 = pnand %p1015_p13, %p1014_p12 }
  0x1c   : > { %p1017_p3 = pneg %p1016_p0 }
  0x1e   : > { %p1022_p7 = pnand %p1020_p5, %p1017_p3 }
  0x20   : > { %1025 = shalt.err (!%p1022_p7)
}
  0x21   : > { %s1026_s16 = scalar_lea.vmem %s1346_s30, 1536  ;;  %p1034_p2 = scmp.lt.s32.totalorder %s1346_s30, %s1346_s30 }
  0x22   : > { %p1027_p9 = scmp.ne.s32.totalorder %s1346_s30, %s1026_s16  ;;  %p1035_p12 = scmp.lt.s32.totalorder %s1026_s16, %s1026_s16 }
  0x24   : > { %p1029_p10 = pnand %p1027_p9, %p1015_p13  ;;  %p1036_p0 = por %p1035_p12, %p1034_p2 }
  0x26   : > { %p1030_p1 = pneg %p1029_p10 }
  0x28   : > { %p1037_p6 = pnand %p1036_p0, %p1030_p1 }
  0x2a   : > { %1040 = shalt.err (!%p1037_p6)
}
  0x2b   : > { %s1249_s17 = smov 128   ;;  %s1250_s29 = smov 8  }
  0x2c   : > { %932 = dma.hbm_to_vmem [thread:$0]  (!%p1353_p11), %s1621_s1, 1536, %s1346_s30, [#allocation6], %s1249_s17, %s1249_s17, %s1250_s29  }
  0x2d   : > { %s1041_s12 = scalar_lea.hbm %s1622_s2, 48 }
  0x2e   : > { %p1042_p2 = scmp.ne.s32.totalorder %s1622_s2, %s1041_s12  ;;  %p1048_p10 = scmp.lt.u32.totalorder %s1041_s12, %s1622_s2 }
  0x30   : > { %p1044_p1 = pnand %p1042_p2, %p1015_p13 }
  0x32   : > { %p1045_p6 = pneg %p1044_p1 }
  0x34   : > { %p1050_p3 = pnand %p1048_p10, %p1045_p6 }
  0x36   : > { %1053 = shalt.err (!%p1050_p3)
}
  0x37   : > { %s1054_s30 = scalar_lea.vmem %s1357_s8, 48  ;;  %s1061_s17 = scalar_lea.vmem %s1357_s8, 64 }
  0x38   : > { %p1055_p5 = scmp.ne.s32.totalorder %s1357_s8, %s1054_s30  ;;  %p1062_p12 = scmp.lt.s32.totalorder %s1357_s8, %s1357_s8 }
  0x39   : > { %p1063_p0 = scmp.lt.s32.totalorder %s1061_s17, %s1054_s30 }
  0x3a   : > { %p1057_p7 = pnand %p1055_p5, %p1015_p13 }
  0x3b   : > { %p1064_p2 = por %p1063_p0, %p1062_p12 }
  0x3c   : > { %p1058_p9 = pneg %p1057_p7 }
  0x3e   : > { %p1065_p1 = pnand %p1064_p2, %p1058_p9 }
  0x40   : > { %1068 = shalt.err (!%p1065_p1)
}
  0x41   : > { %s1251_s29 = smov 16   ;;  %s1252_s7 = smov 1  }
  0x42   : > { %935 = dma.hbm_to_vmem [thread:$0]  (!%p1353_p11), %s1622_s2, 48, %s1357_s8, [#allocation6], %s1251_s29, %s1251_s29, %s1252_s7  }
  0x43   : > { %s41_s11 = sadd.s32 1, %s1241_s22  ;;  %s54_s12 = sadd.s32 1, %s1233_s20 }
  0x44   : > { %p43_p13 = scmp.ge.s32.totalorder %s41_s11, 2  ;;  %p61_p6 = scmp.ne.s32.totalorder %s1233_s20, %s1229_s19 }
  0x45   : > { %p62_p10 = scmp.eq.s32.totalorder %s1245_s23, 0  ;;  %p952_p3 = scmp.lt.s32.totalorder %s1245_s23, 2 }
  0x46   : > { %s1653_s11 = smov (%p43_p13, %s41_s11), 0  ;;  %p1635_p7 = scmp.eq.s32.totalorder %s1321_s24, 1 }
  0x47   : > { %p63_p5 = por %p62_p10, %p61_p6  ;;  %s49_s6 = ssub.s32 %s1241_s22, %s1653_s11 }
  0x48   : > { %p1422_p9 = por %p1635_p7, %p61_p6  ;;  %s263_s14 = sand.u32 1, %s1233_s20  }
  0x49   : > { %p52_p12 = scmp.eq.s32.totalorder %s49_s6, 0  ;;  %s824_s8 = sshll.u32 %s263_s14, 3 }
  0x4a   : > { %s1636_s13 = scalar_select %p1422_p9, 1, 0 }
  0x4b   : > { %s825_s15 = sshll.u32 %s1241_s22, 7  ;;  %s1637_s0 = sld [smem:[#allocation16_spill]] }
  0x4c   : > { %s1431_s16 = scalar_select %p52_p12, %s1233_s20, %s54_s12  }
  0x4d   : > { %s267_s7 = scalar_lea.vmem [#allocation2], %s824_s8  ;;  %p1440_p11 = pnand %p952_p3, %p63_p5 }
  0x4e   : > { %s275_s9 = sshll.u32 %s267_s7, 4  ;;  %s264_s12 = scalar_lea.sflag [#allocation3], %s263_s14  ;;  %s1444_s9 = int_to_ptr.vmem [resolvable:$true] %s275_s9 }
  0x4f   : > { %p1071_p2 = pneg %p1440_p11 }
  0x51   : > { %s1436_s29 = scalar_lea.hbm %s1637_s0, %s825_s15  ;;  %s1074_s30 = scalar_lea.hbm %s1637_s0, 256 }
  0x52   : > { %s1069_s6 = scalar_lea.hbm %s1436_s29, 128  ;;  %p1075_p6 = scmp.lt.u32.totalorder %s1436_s29, %s1637_s0 }
  0x53   : > { %p1070_p0 = scmp.ne.s32.totalorder %s1436_s29, %s1069_s6  ;;  %p1076_p10 = scmp.lt.u32.totalorder %s1074_s30, %s1069_s6 }
  0x54   : > { %p1078_p5 = scmp.lt.u32.totalorder %s1069_s6, %s1436_s29 }
  0x55   : > { %p1072_p1 = pnand %p1071_p2, %p1070_p0  ;;  %p1077_p3 = por %p1076_p10, %p1075_p6 }
  0x57   : > { %p1073_p13 = pneg %p1072_p1  ;;  %p1079_p7 = por %p1078_p5, %p1077_p3 }
  0x59   : > { %p1080_p12 = pnand %p1079_p7, %p1073_p13 }
  0x5b   : > { %1083 = shalt.err (!%p1080_p12)
}
  0x5c   : > { %s1084_s14 = scalar_lea.vmem %s1444_s9, 128  ;;  %s1253_s8 = smov [#allocation2]  }
  0x5d   : > { %p1085_p0 = scmp.ne.s32.totalorder %s1444_s9, %s1084_s14  ;;  %s1089_s15 = sshll.u32 %s1253_s8, 4  ;;  %s1090_s15 = int_to_ptr.vmem [resolvable:$false] %s1089_s15 }
  0x5e   : > { %s1091_s17 = scalar_lea.vmem %s1090_s15, 256  ;;  %p1092_p4 = scmp.lt.s32.totalorder %s1444_s9, %s1090_s15 }
  0x5f   : > { %p1087_p1 = pnand %p1085_p0, %p1071_p2  ;;  %p1093_p6 = scmp.lt.s32.totalorder %s1091_s17, %s1084_s14 }
  0x61   : > { %p1088_p9 = pneg %p1087_p1  ;;  %p1094_p10 = por %p1093_p6, %p1092_p4 }
  0x63   : > { %p1095_p3 = pnand %p1094_p10, %p1088_p9 }
  0x65   : > { %1098 = shalt.err (!%p1095_p3)
}
  0x66   : > { %939 = dma.hbm_to_vmem [thread:$0]  (!%p1440_p11), %s1436_s29, 128, %s1444_s9, %s264_s12  }
  0x67   : > { %284 = sbr.rel (%p1342_p8) target bundleno = 402 (0x192), region = 32  ;;  %s1474_s6 = sand.u32 (!%p1342_p8), 1, %s1229_s19  }
  0x68   : > { %s1477_s30 = sshll.u32 (!%p1342_p8), %s1474_s6, 3  ;;  %s287_s7 = scalar_lea.sflag (!%p1342_p8), [#allocation3], %s1474_s6 }
  0x69   : > { %s290_s14 = scalar_lea.vmem (!%p1342_p8), [#allocation2], %s1477_s30  ;;  %p1639_p4 = scmp.ne.s32.totalorder (!%p1342_p8), %s1631_s26, 0 }
  0x6e   : > { %1208 = dma.done.wait (%p1639_p4), %s287_s7, 128  }
  0x6f   : > { %1210 = vsyncadd (%p1639_p4), %s287_s7, 4294967168  ;;  %p1640_p9 = scmp.eq.s32.totalorder %s1321_s24, 0 }
  0x71   : > { %1212 = dma.done.wait (%p1640_p9), [#allocation6], 1584   ;;  %p1641_p8 = pmov %p1640_p9 }
  0x72   : > { %v1254_v0 = vmov 0.0|0.0   ;;  %vm1255_vm0 = vmmov 0   ;;  %v1256_v1 = vmov 0.0   ;;  %v336_v2 = vld [vmem:[#allocation5] sm:$0xff]  ;;  %v337_v3 = vld [vmem:[#allocation5 + $0x8] sm:$0xff]  ;;  %v338_v4 = vld [vmem:[#allocation5 + $0x10] sm:$0xff] }
  0x73   : > { %1214 = vsyncadd (%p1641_p8), [#allocation6], 4294965712  ;;  %895 = vmatprep.subr.bf16.mxu0 %v1254_v0  ;;  %901 = vmatprep.subr.bf16.mxu1 %v1254_v0  ;;  %v896_v5 = vpack.c.bf16 %v337_v3, %v336_v2  ;;  %v339_v6 = vld [vmem:[#allocation5 + $0x18] sm:$0xff]  ;;  %v423_v7 = vld [vmem:[#allocation5 + $0x20] sm:$0xff]  ;;  %vm347_vm1 = vcmask 261120   ;;  %s1499_s28 = sshll.u32 %s1237_s21, 7 }
  0x74   : > { %870 = vmatprep.mubr.msk.f32.mxu0 %vm1255_vm0, %v1256_v1  ;;  %881 = vmatprep.mubr.msk.f32.mxu1 %vm1255_vm0, %v1256_v1  ;;  %v424_v8 = vld [vmem:[#allocation5 + $0x28] sm:$0xff]  ;;  %v899_v10 = vpack.c.bf16 %v339_v6, %v338_v4  ;;  %v425_v11 = vld [vmem:[#allocation5 + $0x30] sm:$0xff]  ;;  %v426_v12 = vld [vmem:[#allocation5 + $0x38] sm:$0xff]  ;;  %s320_s29 = scalar_lea.vmem [#allocation8], %s1477_s30  ;;  %s327_s10 = scalar_lea.vmem [#allocation9], %s1477_s30 }
  0x75   : > { %v902_v9 = vpack.c.bf16 %v424_v8, %v423_v7  ;;  %897 = vmatpush3.bf16.msra.mxu0 %v896_v5  ;;  %v507_v13 = vld [vmem:[#allocation5 + $0x40] sm:$0xff]  ;;  %v508_v14 = vld [vmem:[#allocation5 + $0x48] sm:$0xff]  ;;  %v905_v15 = vpack.c.bf16 %v426_v12, %v425_v11  ;;  %v335_v16 = vld [vmem:[%s290_s14] sm:$0xff]  ;;  %s616_s9 = sshll.u32 %s320_s29, 4  ;;  %s631_s12 = sshll.u32 %s327_s10, 4  ;;  %s1509_s9 = int_to_ptr.vmem [resolvable:$true] %s616_s9  ;;  %s1517_s12 = int_to_ptr.vmem [resolvable:$true] %s631_s12 }
  0x76   : > { %898 = vmatprep.subr.bf16.mxu0 %v1254_v0  ;;  %v908_v17 = vpack.c.bf16 %v508_v14, %v507_v13  ;;  %v509_v18 = vld [vmem:[#allocation5 + $0x50] sm:$0xff]  ;;  %v510_v19 = vld [vmem:[#allocation5 + $0x58] sm:$0xff]  ;;  %v833_v21 = vld [vmem:[#allocation7] ss:$0 sm:$0xff]  ;;  %s1507_s17 = scalar_lea.hbm %s1623_s3, %s1499_s28  ;;  %s1515_s14 = scalar_lea.hbm %s1624_s4, %s1499_s28 }
  0x77   : > { %903 = vmatpush3.bf16.msra.mxu1 %v902_v9  ;;  %v911_v20 = vpack.c.bf16 %v510_v19, %v509_v18  ;;  %v835_v22 = vld [vmem:[#allocation7 + $0x1] ss:$0 sm:$0xff]  ;;  %s591_s8 = scalar_lea.sflag [#allocation4], %s1474_s6  ;;  %s1099_s15 = scalar_lea.vmem %s1509_s9, 128 }
  0x78   : > { %904 = vmatprep.subr.bf16.mxu1 %v1254_v0  ;;  %p1100_p11 = scmp.ne.s32.totalorder %s1509_s9, %s1099_s15  ;;  %p1642_p2 = scmp.ne.s32.totalorder %s1636_s13, 0 }
  0x79   : > { %900 = vmatpush3.bf16.msra.mxu0 %v899_v10  ;;  %s1257_s25 = smov [#allocation8]  }
  0x7a   : > { %907 = vmatprep.subr.bf16.mxu0 %v1254_v0  ;;  %p1101_p13 = pnand %p1100_p11, %p1642_p2  ;;  %s1103_s26 = sshll.u32 %s1257_s25, 4  ;;  %s1104_s26 = int_to_ptr.vmem [resolvable:$false] %s1103_s26 }
  0x7b   : > { %906 = vmatpush3.bf16.msra.mxu1 %v905_v15  ;;  %s1105_s0 = scalar_lea.vmem %s1104_s26, 256  ;;  %p1106_p7 = scmp.lt.s32.totalorder %s1509_s9, %s1104_s26 }
  0x7c   : > { %871 = vmatmul.mubr.msk.f32.vlgmr.msra.gmra.mrb[0].mxu0 %vm347_vm1, %v335_v16  ;;  %p1102_p5 = pneg %p1101_p13  ;;  %p1107_p12 = scmp.lt.s32.totalorder %s1105_s0, %s1099_s15 }
  0x7d   : > { %909 = vmatpush3.bf16.msra.mxu0 %v908_v17  ;;  %892 = vmatprep.mubr.msk.f32.mxu0 %vm1255_vm0, %v1256_v1 }
  0x7e   : > { %882 = vmatmul.mubr.msk.f32.vlgmr.msra.gmra.mrb[0].mxu1 %vm347_vm1, %v335_v16  ;;  %910 = vmatprep.subr.bf16.mxu0 %v1254_v0  ;;  %p1108_p0 = por %p1107_p12, %p1106_p7 }
  0x80   : > { %p1109_p1 = pnand %p1108_p0, %p1102_p5 }
  0x81   : > { %912 = vmatpush3.bf16.msra.mxu0 %v911_v20 }
  0x84   : > { %893 = vmatmul.mubr.msk.f32.vlgmr.msra.gmra.mrb[2].mxu0 %vm347_vm1, %v335_v16 }
 0x14f   : > { %v417_v23 = vpop.f32.mrb[0].mxu0 }
 0x150   : > { %v418_v24 = vadd.f32 %v833_v21, %v417_v23  ;;  %v872_v25 = vpop.f32.mrb[1].mxu0 }
 0x151   : > { %v501_v26 = vpop.f32.mrb[0].mxu1 }
 0x152   : > { %v502_v27 = vadd.f32 %v835_v22, %v501_v26  ;;  %v883_v28 = vpop.f32.mrb[1].mxu1  ;;  %421 = vst.msk [vmem:[%s320_s29] sm:$0xff] %vm347_vm1, %v418_v24 }
 0x154   : > { %505 = vst.msk [vmem:[%s327_s10] sm:$0xff] %vm347_vm1, %v502_v27 }
 0x155   : > { %1112 = shalt.err (!%p1109_p1)
}
 0x156   : > { %s1113_s6 = scalar_lea.hbm %s1507_s17, 128  ;;  %s1117_s25 = scalar_lea.hbm %s1623_s3, 256 }
 0x157   : > { %p1114_p6 = scmp.ne.s32.totalorder %s1507_s17, %s1113_s6  ;;  %p1118_p4 = scmp.lt.u32.totalorder %s1507_s17, %s1623_s3 }
 0x158   : > { %p1119_p9 = scmp.lt.u32.totalorder %s1117_s25, %s1113_s6  ;;  %p1121_p11 = scmp.lt.u32.totalorder %s1113_s6, %s1507_s17 }
 0x159   : > { %p1115_p10 = pnand %p1114_p6, %p1642_p2 }
 0x15a   : > { %p1120_p8 = por %p1119_p9, %p1118_p4 }
 0x15b   : > { %p1116_p3 = pneg %p1115_p10 }
 0x15c   : > { %p1122_p13 = por %p1121_p11, %p1120_p8 }
 0x15e   : > { %p1123_p5 = pnand %p1122_p13, %p1116_p3 }
 0x160   : > { %1126 = shalt.err (!%p1123_p5)
}
 0x161   : > { %923 = dma.vmem_to_hbm [thread:$0]  (%p1642_p2), %s1509_s9, 128, %s1507_s17, %s591_s8  }
 0x162   : > { %s1643_s0 = sand.u32 1, %s1321_s24   ;;  %s1127_s15 = scalar_lea.vmem %s1517_s12, 128 }
 0x163   : > { %s1545_s7 = scalar_lea.sflag [#allocation10], %s1643_s0  ;;  %p1128_p7 = scmp.ne.s32.totalorder %s1517_s12, %s1127_s15 }
 0x164   : > { %s1258_s6 = smov [#allocation9]  }
 0x165   : > { %p1129_p12 = pnand %p1128_p7, %p1642_p2  ;;  %s1131_s29 = sshll.u32 %s1258_s6, 4  ;;  %s1132_s29 = int_to_ptr.vmem [resolvable:$false] %s1131_s29 }
 0x166   : > { %s1133_s10 = scalar_lea.vmem %s1132_s29, 256  ;;  %p1134_p1 = scmp.lt.s32.totalorder %s1517_s12, %s1132_s29 }
 0x167   : > { %p1130_p0 = pneg %p1129_p12  ;;  %p1135_p6 = scmp.lt.s32.totalorder %s1133_s10, %s1127_s15 }
 0x169   : > { %p1136_p10 = por %p1135_p6, %p1134_p1 }
 0x16b   : > { %p1137_p3 = pnand %p1136_p10, %p1130_p0 }
 0x16d   : > { %1140 = shalt.err (!%p1137_p3)
}
 0x16e   : > { %s1141_s24 = scalar_lea.hbm %s1515_s14, 128  ;;  %s1145_s8 = scalar_lea.hbm %s1624_s4, 256 }
 0x16f   : > { %p1142_p4 = scmp.ne.s32.totalorder %s1515_s14, %s1141_s24  ;;  %p1146_p11 = scmp.lt.u32.totalorder %s1515_s14, %s1624_s4 }
 0x170   : > { %p1147_p13 = scmp.lt.u32.totalorder %s1145_s8, %s1141_s24  ;;  %p1149_p7 = scmp.lt.u32.totalorder %s1141_s24, %s1515_s14 }
 0x171   : > { %p1143_p9 = pnand %p1142_p4, %p1642_p2 }
 0x172   : > { %p1148_p5 = por %p1147_p13, %p1146_p11 }
 0x173   : > { %p1144_p8 = pneg %p1143_p9 }
 0x174   : > { %p1150_p12 = por %p1149_p7, %p1148_p5 }
 0x176   : > { %p1151_p0 = pnand %p1150_p12, %p1144_p8 }
 0x178   : > { %1154 = shalt.err (!%p1151_p0)
}
 0x179   : > { %924 = dma.vmem_to_hbm [thread:$0]  (%p1642_p2), %s1517_s12, 128, %s1515_s14, %s1545_s7   ;;  %v837_v29 = vld [vmem:[#allocation7 + $0x2] ss:$0 sm:$0xff]  ;;  %v585_v30 = vpop.f32.mrb[2].mxu0 }
 0x17a   : > { %s334_s26 = scalar_lea.vmem [#allocation11], %s1477_s30  ;;  %v586_v31 = vadd.f32 %v837_v29, %v585_v30  ;;  %v894_v32 = vpop.f32.mrb[3].mxu0  ;;  %s1574_s29 = scalar_lea.hbm %s1625_s5, %s1499_s28 }
 0x17b   : > { %s646_s0 = sshll.u32 %s334_s26, 4  ;;  %s1259_s12 = smov [#allocation11]   ;;  %s647_s0 = int_to_ptr.vmem [resolvable:$true] %s646_s0 }
 0x17c   : > { %589 = vst.msk [vmem:[%s334_s26] sm:$0xff] %vm347_vm1, %v586_v31  ;;  %s1155_s10 = scalar_lea.vmem %s647_s0, 128  ;;  %s1159_s14 = sshll.u32 %s1259_s12, 4  ;;  %s1160_s14 = int_to_ptr.vmem [resolvable:$false] %s1159_s14 }
 0x17d   : > { %p1156_p1 = scmp.ne.s32.totalorder %s647_s0, %s1155_s10  ;;  %s1161_s30 = scalar_lea.vmem %s1160_s14, 256 }
 0x17e   : > { %p1162_p3 = scmp.lt.s32.totalorder %s647_s0, %s1160_s14  ;;  %p1163_p4 = scmp.lt.s32.totalorder %s1161_s30, %s1155_s10 }
 0x17f   : > { %p1157_p6 = pnand %p1156_p1, %p1642_p2 }
 0x180   : > { %p1164_p9 = por %p1163_p4, %p1162_p3 }
 0x181   : > { %p1158_p10 = pneg %p1157_p6 }
 0x183   : > { %p1165_p8 = pnand %p1164_p9, %p1158_p10 }
 0x185   : > { %1168 = shalt.err (!%p1165_p8)
}
 0x186   : > { %s1169_s28 = scalar_lea.hbm %s1574_s29, 128  ;;  %s1173_s17 = scalar_lea.hbm %s1625_s5, 256 }
 0x187   : > { %p1170_p11 = scmp.ne.s32.totalorder %s1574_s29, %s1169_s28  ;;  %p1174_p7 = scmp.lt.u32.totalorder %s1574_s29, %s1625_s5 }
 0x188   : > { %p1175_p12 = scmp.lt.u32.totalorder %s1173_s17, %s1169_s28  ;;  %p1177_p1 = scmp.lt.u32.totalorder %s1169_s28, %s1574_s29 }
 0x189   : > { %p1171_p13 = pnand %p1170_p11, %p1642_p2 }
 0x18a   : > { %p1176_p0 = por %p1175_p12, %p1174_p7 }
 0x18b   : > { %p1172_p5 = pneg %p1171_p13 }
 0x18c   : > { %p1178_p6 = por %p1177_p1, %p1176_p0 }
 0x18e   : > { %p1179_p10 = pnand %p1178_p6, %p1172_p5 }
 0x190   : > { %1182 = shalt.err (!%p1179_p10)
}
 0x191   : > { %925 = dma.vmem_to_hbm [thread:$0]  (%p1642_p2), %s647_s0, 128, %s1574_s29, %s1545_s7  }
 0x192 PF: > { %s658_s21 = sand.u32 1, %s1225_s18   ;;  %p1644_p3 = scmp.ne.s32.totalorder %s1632_s27, 0 }
 0x193   : > { %p1645_p4 = scmp.ge.s32.totalorder %s1245_s23, 2  ;;  %s659_s26 = scalar_lea.sflag [#allocation4], %s658_s21 }
 0x195   : > { %p941_p9 = pnand %p1645_p4, %p1644_p3 }
 0x197   : > { %1216 = dma.done.wait (!%p941_p9), %s659_s26, 128  }
 0x198   : > { %1218 = vsyncadd (!%p941_p9), %s659_s26, 4294967168  ;;  %s1646_s15 = sadd.s32 4294967294, %s1245_s23  }
 0x199   : > { %s667_s6 = sand.u32 1, %s1646_s15  }
 0x19a   : > { %s668_s10 = scalar_lea.sflag [#allocation10], %s667_s6 }
 0x19b   : > { %1220 = dma.done.wait (!%p941_p9), %s668_s10, 256  }
 0x19c   : > { %1222 = vsyncadd (!%p941_p9), %s668_s10, 4294967040  ;;  %s26_s23 = sadd.s32 1, %s1245_s23   ;;  %s1647_s18 = smov %s1229_s19 }
 0x19d   : > { %p23_p2 = scmp.ge.s32.totalorder %s26_s23, 4   ;;  %s1648_s19 = smov %s1233_s20 }
 0x19e   : > { %s1649_s20 = smov %s1431_s16  ;;  %s1650_s21 = smov %s1241_s22 }
 0x19f   : > { %s1651_s22 = smov %s1653_s11  ;;  %25 = sbr.rel (!%p23_p2) target bundleno = 11 (0xb), region = 123 }
 0x1a6   :  { %682 = vsyncpa [#allocation3], 1 }
 0x1a7   :  { %684 = vsyncpa [#allocation3 + $0x1], 1 }
 0x1a8   :  { %685 = vsyncpa [#allocation6], 1 }
 0x1a9   :  { %686 = vsyncpa [#allocation4], 1 }
 0x1aa   :  { %688 = vsyncpa [#allocation4 + $0x1], 1 }
 0x1ab   :  { %689 = vsyncpa [#allocation10], 1 }
 0x1ac   :  { %691 = vsyncpa [#allocation10 + $0x1], 1 }

</bundles_post_ra>
